<compile_context>
chip_gen: v6e
topology: v6e:2x2x1
jax: 0.10.0
libtpu: 0.0.40
codegen_flags: <defaults>
</compile_context>

<pallas_src>
import functools

import jax
import jax.numpy as jnp
import numpy as np
from jax import lax
from jax.experimental import pallas as pl
from jax.experimental.pallas import tpu as pltpu


def _ceil_to(n, m):
    return -(-n // m) * m


# ----------------------------------------------------------------------------- kernel
def make_fused_kernel(S, L, gnn_tag):
    H, I, Cp = L["H"], L["I"], L["Cp"]
    H3, H4, H8 = 3 * H, 4 * H, 8 * H
    R_GCNW, R_WIH, R_WHH = L["R_GCNW"], L["R_WIH"], L["R_WHH"]
    R_WFCF, R_WFCB, R_BIAS = L["R_WFCF"], L["R_WFCB"], L["R_BIAS"]

    def gates(g):
        # g: (1, 4H), columns pre-permuted to [i, f, o | g] in pack_params.
        sg = jax.nn.sigmoid(g[:, 0:H3])     # 3H sigmoid
        tg = jnp.tanh(g[:, H3:H4])          # H tanh
        return sg[:, 0:H], sg[:, H:2 * H], sg[:, 2 * H:H3], tg

    def body(idx_ref, a_ref, emb_ref, slab_ref, val_ref, gx_ref):
        # ---------------- embedding gather (time-major, B == 1) ----------------
        rows = [emb_ref[pl.ds(idx_ref[s], 1), :] for s in range(S)]
        feat = jnp.concatenate(rows, axis=0)                        # (S, I)

        # ---------------- GCNConv + ReLU prologue ------------------------------
        if gnn_tag:
            xw = jnp.dot(feat, slab_ref[R_GCNW:R_GCNW + I, 0:H],
                         preferred_element_type=jnp.float32)        # (S, H)
            feat = jnp.maximum(a_ref[0] * xw
                               + slab_ref[R_BIAS:R_BIAS + 1, 0:H], 0.0)

        # --------- hoisted input projection for BOTH directions ----------------
        # one fat matmul off the serial path: (S, I) @ (I, 8H) + (1, 8H) -> VMEM scratch
        gx_ref[...] = (jnp.dot(feat, slab_ref[R_WIH:R_WIH + I, 0:H8],
                               preferred_element_type=jnp.float32)
                       + slab_ref[R_BIAS + 1:R_BIAS + 2, 0:H8])

        whh = slab_ref[R_WHH:R_WHH + H, 0:H4]                       # (H, 4H), vreg-resident

        # ---------------- forward recurrence, statically unrolled --------------
        h = None
        c = None
        for t in range(S):
            g_in = gx_ref[t:t + 1, 0:H4]                            # aligned VMEM load
            if t > 0:   # h == 0 at t == 0, skip the recurrent matmul
                g_in = g_in + jnp.dot(h, whh, preferred_element_type=jnp.float32)
            i_g, f_g, o_g, g_g = gates(g_in)
            c = (f_g * c + i_g * g_g) if t > 0 else (i_g * g_g)
            h = o_g * jnp.tanh(c)

        # ---------------- backward direction: exactly one cell -----------------
        # outputs[-1] (backward half) = first backward step from zero state on x[S-1];
        # zero initial h makes the h @ Whh_b term vanish.
        i_b, _f_b, o_b, g_b = gates(gx_ref[S - 1:S, H4:H8])
        h_b = o_b * jnp.tanh(i_b * g_b)

        # ---------------- FC head (dropout == identity in eval) ----------------
        val_ref[...] = (jnp.dot(h, slab_ref[R_WFCF:R_WFCF + H, 0:Cp],
                                preferred_element_type=jnp.float32)
                        + jnp.dot(h_b, slab_ref[R_WFCB:R_WFCB + H, 0:Cp],
                                  preferred_element_type=jnp.float32)
                        + slab_ref[R_BIAS + 2:R_BIAS + 3, 0:Cp])

    if gnn_tag:
        return body

    def body_nognn(idx_ref, emb_ref, slab_ref, val_ref, gx_ref):
        return body(idx_ref, None, emb_ref, slab_ref, val_ref, gx_ref)

    return body_nognn


# ----------------------------------------------------------------------------- glue
def gcn_norm_dense(edge_index, num_nodes):
    """Dense equivalent of PyG gcn_norm (add remaining self-loops, sym-normalize)."""
    row, col = edge_index[0], edge_index[1]
    a = jnp.zeros((num_nodes, num_nodes), jnp.float32).at[col, row].add(1.0)
    diag = jnp.diagonal(a)
    a = a + jnp.diag(jnp.where(diag == 0.0, 1.0, 0.0))
    deg = a.sum(axis=1)
    dinv = jnp.where(deg > 0, lax.rsqrt(deg), 0.0)
    return dinv[:, None] * a * dinv[None, :]


def init_params(key, n_poi, n_input, n_hidden, n_classes):
    ks = jax.random.split(key, 12)
    H = n_hidden
    s_lstm = 1.0 / np.sqrt(H)

    def u(k, shape, s):
        return jax.random.uniform(k, shape, jnp.float32, -s, s)

    params = {}
    params["emb"] = jax.random.normal(ks[0], (n_poi, n_input), jnp.float32)
    params["gcn_w"] = u(ks[1], (n_input, H), 1.0 / np.sqrt(n_input))
    params["gcn_b"] = jnp.zeros((H,), jnp.float32)

    for d, keys in zip(("f", "b"), (ks[2:6], ks[6:10])):
        k_wih, k_whh, k_bih, k_bhh = keys
        wih = u(k_wih, (4 * H, n_input), s_lstm)
        whh = u(k_whh, (4 * H, H), s_lstm)
        bih = u(k_bih, (4 * H,), s_lstm)
        bhh = u(k_bhh, (4 * H,), s_lstm)
        # torch __init__ fills the forget-gate chunk [H:2H] of *every* bias with 1.0
        bih = bih.at[H:2 * H].set(1.0)
        bhh = bhh.at[H:2 * H].set(1.0)
        params[f"wih_{d}"] = wih
        params[f"whh_{d}"] = whh
        params[f"b_{d}"] = bih + bhh

    params["fc_w"] = u(ks[10], (n_classes, 2 * H), 1.0 / np.sqrt(2 * H))
    params["fc_b"] = u(ks[11], (n_classes,), 1.0 / np.sqrt(2 * H))
    return params


def pack_params(params, n_classes):
    """Pack every weight/bias into ONE 128-lane-aligned VMEM slab (single input DMA),
    pre-transposed and with LSTM gate columns permuted to [i, f, o | g]."""
    H = params["whh_f"].shape[1]
    I = params["wih_f"].shape[1]
    C = n_classes
    Cp = max(128, _ceil_to(C, 128))           # lane-dense FC / output width
    LW = max(128, _ceil_to(8 * H, 128))       # slab lane width

    def reorder(w):  # (..., 4H) columns [i, f, g, o] -> [i, f, o, g]
        return jnp.concatenate([w[..., 0:2 * H], w[..., 3 * H:4 * H],
                                w[..., 2 * H:3 * H]], axis=-1)

    wih_cat = jnp.concatenate([reorder(params["wih_f"].T),
                               reorder(params["wih_b"].T)], axis=1)     # (I, 8H)
    whh_f = reorder(params["whh_f"].T)                                  # (H, 4H)
    b_cat = jnp.concatenate([reorder(params["b_f"][None, :]),
                             reorder(params["b_b"][None, :])], axis=1)  # (1, 8H)
    wfc = params["fc_w"].T                                              # (2H, C)
    gcn_w = params["gcn_w"]                                             # (I, H)
    gcn_b = params["gcn_b"][None, :]                                    # (1, H)
    fc_b = params["fc_b"][None, :]                                      # (1, C)

    r = 0
    R_GCNW = r; r += _ceil_to(I, 8)
    R_WIH = r;  r += _ceil_to(I, 8)
    R_WHH = r;  r += _ceil_to(H, 8)
    R_WFCF = r; r += _ceil_to(H, 8)
    R_WFCB = r; r += _ceil_to(H, 8)
    R_BIAS = r; r += 8
    NROWS = r

    slab = jnp.zeros((NROWS, LW), jnp.float32)

    def put(s, r0, arr):
        return s.at[r0:r0 + arr.shape[0], 0:arr.shape[1]].set(arr)

    slab = put(slab, R_GCNW, gcn_w)
    slab = put(slab, R_WIH, wih_cat)
    slab = put(slab, R_WHH, whh_f)
    slab = put(slab, R_WFCF, wfc[:H, :])        # zero-padded to Cp lanes
    slab = put(slab, R_WFCB, wfc[H:, :])
    slab = put(slab, R_BIAS + 0, gcn_b)
    slab = put(slab, R_BIAS + 1, b_cat)
    slab = put(slab, R_BIAS + 2, fc_b)

    layout = dict(H=H, I=I, Cp=Cp, LW=LW, R_GCNW=R_GCNW, R_WIH=R_WIH, R_WHH=R_WHH,
                  R_WFCF=R_WFCF, R_WFCB=R_WFCB, R_BIAS=R_BIAS, NROWS=NROWS)
    packed = {"emb": params["emb"], "slab": slab}
    return packed, layout


def bilstm_gnn_forward(packed, x_idx, edge_index, *, layout, gnn_tag, n_classes):
    B, S = x_idx.shape
    assert B == 1, "torch .view(1, n_classes) implies a single trajectory (batch = 1)"
    if gnn_tag:
        assert layout["H"] == layout["I"], "gnn path requires n_hidden == n_input"

    idx_flat = x_idx.reshape(S).astype(jnp.int32)   # time-major order for B == 1

    kernel = make_fused_kernel(S, layout, gnn_tag)
    smem = pl.BlockSpec(memory_space=pltpu.MemorySpace.SMEM)
    vmem = pl.BlockSpec(memory_space=pltpu.MemorySpace.VMEM)

    if gnn_tag:
        a_flat = gcn_norm_dense(edge_index, B).reshape(B * B)   # (1,) scalar for B == 1
        args = (idx_flat, a_flat, packed["emb"], packed["slab"])
        specs = [smem, smem, vmem, vmem]
    else:
        args = (idx_flat, packed["emb"], packed["slab"])
        specs = [smem, vmem, vmem]

    out = pl.pallas_call(
        kernel,
        out_shape=jax.ShapeDtypeStruct((1, layout["Cp"]), jnp.float32),
        in_specs=specs,
        out_specs=vmem,
        scratch_shapes=[pltpu.VMEM((S, 8 * layout["H"]), jnp.float32)],
    )(*args)
    return out[:, :n_classes].reshape(1, n_classes)


# ----------------------------------------------------------------------------- pure-JAX reference
def reference_forward(params, x_idx, edge_index, *, gnn_tag, n_classes):
    B, S = x_idx.shape
    H = params["whh_f"].shape[1]
    feats = jnp.take(params["emb"], x_idx, axis=0)
    if gnn_tag:
        a_norm = gcn_norm_dense(edge_index, B)
        xw = jnp.einsum("bsi,ih->bsh", feats, params["gcn_w"])
        feats = jax.nn.relu(jnp.einsum("bn,nsh->bsh", a_norm, xw) + params["gcn_b"])
    x_seq = jnp.transpose(feats, (1, 0, 2))

    def run(x_dir, wih, whh, b):
        def step(carry, x_t):
            h, c = carry
            g = x_t @ wih.T + h @ whh.T + b
            i, f, gg, o = jnp.split(g, 4, axis=-1)
            c = jax.nn.sigmoid(f) * c + jax.nn.sigmoid(i) * jnp.tanh(gg)
            h = jax.nn.sigmoid(o) * jnp.tanh(c)
            return (h, c), h
        h0 = jnp.zeros((B, H), jnp.float32)
        _, hs = lax.scan(step, (h0, h0), x_dir)
        return hs

    hs_f = run(x_seq, params["wih_f"], params["whh_f"], params["b_f"])
    hs_b = run(x_seq[::-1], params["wih_b"], params["whh_b"], params["b_b"])[::-1]
    outputs = jnp.concatenate([hs_f, hs_b], axis=-1)
    val = outputs[-1] @ params["fc_w"].T + params["fc_b"]
    return val.reshape(1, n_classes)


# ----------------------------------------------------------------------------- main
if __name__ == "__main__":
    n_poi, n_input, n_hidden, n_classes = 50, 32, 32, 16
    B, S = 1, 8      # torch .view(1, n_classes) implies a single trajectory (batch = 1)
    gnn_tag = True   # gnn path feeds the LSTM, so n_hidden == n_input

    key = jax.random.PRNGKey(0)
    kp, kx = jax.random.split(key)
    params = init_params(kp, n_poi, n_input, n_hidden, n_classes)
    packed, layout = pack_params(params, n_classes)
    x_idx = jax.random.randint(kx, (B, S), 0, n_poi, dtype=jnp.int32)
    edge_index = jnp.zeros((2, 1), dtype=jnp.int32)   # single (0 -> 0) edge on the node dim

    fwd = jax.jit(functools.partial(bilstm_gnn_forward, layout=layout,
                                    gnn_tag=gnn_tag, n_classes=n_classes))
    val = jax.block_until_ready(fwd(packed, x_idx, edge_index))

    ref = reference_forward(params, x_idx, edge_index,
                            gnn_tag=gnn_tag, n_classes=n_classes)
    np.testing.assert_allclose(np.asarray(val), np.asarray(ref), rtol=1e-4, atol=1e-4)
    print("KERNEL_OK")
</pallas_src>

<mosaic_0001>
module attributes {stable_mosaic.version = 11 : i64} {
  func.func @body(%arg0: memref<8xi32, #tpu.memory_space<smem>>, %arg1: memref<1xf32, #tpu.memory_space<smem>>, %arg2: memref<50x32xf32, #tpu.memory_space<vmem>>, %arg3: memref<168x256xf32, #tpu.memory_space<vmem>>, %arg4: memref<1x128xf32, #tpu.memory_space<vmem>>, %arg5: memref<8x256xf32, #tpu.memory_space<vmem>>) attributes {dimension_semantics = [], scalar_prefetch = 0 : i64, scratch_operands = 1 : i64, tpu.core_type = #tpu.core_type<tc>} {
    %c0 = arith.constant 0 : index
    %0 = memref.load %arg0[%c0] : memref<8xi32, #tpu.memory_space<smem>>
    %1 = arith.index_cast %0 : i32 to index
    %c0_0 = arith.constant 0 : index
    %2 = vector.load %arg2[%1, %c0_0] : memref<50x32xf32, #tpu.memory_space<vmem>>, vector<1x32xf32>
    %c1 = arith.constant 1 : index
    %3 = memref.load %arg0[%c1] : memref<8xi32, #tpu.memory_space<smem>>
    %4 = arith.index_cast %3 : i32 to index
    %c0_1 = arith.constant 0 : index
    %5 = vector.load %arg2[%4, %c0_1] : memref<50x32xf32, #tpu.memory_space<vmem>>, vector<1x32xf32>
    %c2 = arith.constant 2 : index
    %6 = memref.load %arg0[%c2] : memref<8xi32, #tpu.memory_space<smem>>
    %7 = arith.index_cast %6 : i32 to index
    %c0_2 = arith.constant 0 : index
    %8 = vector.load %arg2[%7, %c0_2] : memref<50x32xf32, #tpu.memory_space<vmem>>, vector<1x32xf32>
    %c3 = arith.constant 3 : index
    %9 = memref.load %arg0[%c3] : memref<8xi32, #tpu.memory_space<smem>>
    %10 = arith.index_cast %9 : i32 to index
    %c0_3 = arith.constant 0 : index
    %11 = vector.load %arg2[%10, %c0_3] : memref<50x32xf32, #tpu.memory_space<vmem>>, vector<1x32xf32>
    %c4 = arith.constant 4 : index
    %12 = memref.load %arg0[%c4] : memref<8xi32, #tpu.memory_space<smem>>
    %13 = arith.index_cast %12 : i32 to index
    %c0_4 = arith.constant 0 : index
    %14 = vector.load %arg2[%13, %c0_4] : memref<50x32xf32, #tpu.memory_space<vmem>>, vector<1x32xf32>
    %c5 = arith.constant 5 : index
    %15 = memref.load %arg0[%c5] : memref<8xi32, #tpu.memory_space<smem>>
    %16 = arith.index_cast %15 : i32 to index
    %c0_5 = arith.constant 0 : index
    %17 = vector.load %arg2[%16, %c0_5] : memref<50x32xf32, #tpu.memory_space<vmem>>, vector<1x32xf32>
    %c6 = arith.constant 6 : index
    %18 = memref.load %arg0[%c6] : memref<8xi32, #tpu.memory_space<smem>>
    %19 = arith.index_cast %18 : i32 to index
    %c0_6 = arith.constant 0 : index
    %20 = vector.load %arg2[%19, %c0_6] : memref<50x32xf32, #tpu.memory_space<vmem>>, vector<1x32xf32>
    %c7 = arith.constant 7 : index
    %21 = memref.load %arg0[%c7] : memref<8xi32, #tpu.memory_space<smem>>
    %22 = arith.index_cast %21 : i32 to index
    %c0_7 = arith.constant 0 : index
    %23 = vector.load %arg2[%22, %c0_7] : memref<50x32xf32, #tpu.memory_space<vmem>>, vector<1x32xf32>
    %24 = tpu.concatenate %2, %5, %8, %11, %14, %17, %20, %23 in 0 : vector<1x32xf32>, vector<1x32xf32>, vector<1x32xf32>, vector<1x32xf32>, vector<1x32xf32>, vector<1x32xf32>, vector<1x32xf32>, vector<1x32xf32> -> vector<8x32xf32>
    %c0_8 = arith.constant 0 : index
    %c0_9 = arith.constant 0 : index
    %25 = vector.load %arg3[%c0_8, %c0_9] : memref<168x256xf32, #tpu.memory_space<vmem>>, vector<32x32xf32>
    %cst = arith.constant dense<0.000000e+00> : vector<8x32xf32>
    %26 = tpu.matmul %24, %25, %cst {dimension_numbers = #tpu.dot_dimension_numbers<[1], [0], [0], [1], [0, 0, 1, 1], [], []>} : vector<8x32xf32>, vector<32x32xf32>, vector<8x32xf32> -> vector<8x32xf32>
    %c0_10 = arith.constant 0 : index
    %27 = memref.load %arg1[%c0_10] : memref<1xf32, #tpu.memory_space<smem>>
    %28 = vector.broadcast %27 : f32 to vector<8x32xf32>
    %29 = arith.mulf %28, %26 : vector<8x32xf32>
    %c160 = arith.constant 160 : index
    %c0_11 = arith.constant 0 : index
    %30 = vector.load %arg3[%c160, %c0_11] : memref<168x256xf32, #tpu.memory_space<vmem>>, vector<1x32xf32>
    %31 = vector.broadcast %30 : vector<1x32xf32> to vector<8x32xf32>
    %32 = arith.addf %29, %31 : vector<8x32xf32>
    %cst_12 = arith.constant 0.000000e+00 : f32
    %33 = vector.broadcast %cst_12 : f32 to vector<8x32xf32>
    %34 = arith.maximumf %32, %33 : vector<8x32xf32>
    %c32 = arith.constant 32 : index
    %c0_13 = arith.constant 0 : index
    %35 = vector.load %arg3[%c32, %c0_13] : memref<168x256xf32, #tpu.memory_space<vmem>>, vector<32x256xf32>
    %cst_14 = arith.constant dense<0.000000e+00> : vector<8x256xf32>
    %36 = tpu.matmul %34, %35, %cst_14 {dimension_numbers = #tpu.dot_dimension_numbers<[1], [0], [0], [1], [0, 0, 1, 1], [], []>} : vector<8x32xf32>, vector<32x256xf32>, vector<8x256xf32> -> vector<8x256xf32>
    %c161 = arith.constant 161 : index
    %c0_15 = arith.constant 0 : index
    %37 = vector.load %arg3[%c161, %c0_15] : memref<168x256xf32, #tpu.memory_space<vmem>>, vector<1x256xf32>
    %38 = vector.broadcast %37 : vector<1x256xf32> to vector<8x256xf32>
    %39 = arith.addf %36, %38 : vector<8x256xf32>
    %c0_16 = arith.constant 0 : index
    %c0_17 = arith.constant 0 : index
    %40 = vector.load %arg5[%c0_16, %c0_17] : memref<8x256xf32, #tpu.memory_space<vmem>>, vector<8x256xf32>
    tpu.vector_store %arg5[%c0_16, %c0_17], %39 {strides = array<i32>} : memref<8x256xf32, #tpu.memory_space<vmem>>, vector<8x256xf32>,
    %c64 = arith.constant 64 : index
    %c0_18 = arith.constant 0 : index
    %41 = vector.load %arg3[%c64, %c0_18] : memref<168x256xf32, #tpu.memory_space<vmem>>, vector<32x128xf32>
    %c0_19 = arith.constant 0 : index
    %c0_20 = arith.constant 0 : index
    %42 = vector.load %arg5[%c0_19, %c0_20] : memref<8x256xf32, #tpu.memory_space<vmem>>, vector<1x128xf32>
    %43 = vector.extract_strided_slice %42 {offsets = [0, 0], sizes = [1, 96], strides = [1, 1]} : vector<1x128xf32> to vector<1x96xf32>
    %44 = arith.negf %43 : vector<1x96xf32>
    %45 = math.exp %44 : vector<1x96xf32>
    %cst_21 = arith.constant 1.000000e+00 : f32
    %46 = vector.broadcast %cst_21 : f32 to vector<1x96xf32>
    %47 = arith.addf %46, %45 : vector<1x96xf32>
    %48 = arith.divf %46, %47 : vector<1x96xf32>
    %49 = vector.extract_strided_slice %42 {offsets = [0, 96], sizes = [1, 32], strides = [1, 1]} : vector<1x128xf32> to vector<1x32xf32>
    %50 = math.tanh %49 : vector<1x32xf32>
    %51 = vector.extract_strided_slice %48 {offsets = [0, 0], sizes = [1, 32], strides = [1, 1]} : vector<1x96xf32> to vector<1x32xf32>
    %52 = vector.extract_strided_slice %48 {offsets = [0, 64], sizes = [1, 32], strides = [1, 1]} : vector<1x96xf32> to vector<1x32xf32>
    %53 = arith.mulf %51, %50 : vector<1x32xf32>
    %54 = math.tanh %53 : vector<1x32xf32>
    %55 = arith.mulf %52, %54 : vector<1x32xf32>
    %c1_22 = arith.constant 1 : index
    %c0_23 = arith.constant 0 : index
    %56 = vector.load %arg5[%c1_22, %c0_23] : memref<8x256xf32, #tpu.memory_space<vmem>>, vector<1x128xf32>
    %cst_24 = arith.constant dense<0.000000e+00> : vector<1x128xf32>
    %57 = tpu.matmul %55, %41, %cst_24 {dimension_numbers = #tpu.dot_dimension_numbers<[1], [0], [0], [1], [0, 0, 1, 1], [], []>} : vector<1x32xf32>, vector<32x128xf32>, vector<1x128xf32> -> vector<1x128xf32>
    %58 = arith.addf %56, %57 : vector<1x128xf32>
    %59 = vector.extract_strided_slice %58 {offsets = [0, 0], sizes = [1, 96], strides = [1, 1]} : vector<1x128xf32> to vector<1x96xf32>
    %60 = arith.negf %59 : vector<1x96xf32>
    %61 = math.exp %60 : vector<1x96xf32>
    %cst_25 = arith.constant 1.000000e+00 : f32
    %62 = vector.broadcast %cst_25 : f32 to vector<1x96xf32>
    %63 = arith.addf %62, %61 : vector<1x96xf32>
    %64 = arith.divf %62, %63 : vector<1x96xf32>
    %65 = vector.extract_strided_slice %58 {offsets = [0, 96], sizes = [1, 32], strides = [1, 1]} : vector<1x128xf32> to vector<1x32xf32>
    %66 = math.tanh %65 : vector<1x32xf32>
    %67 = vector.extract_strided_slice %64 {offsets = [0, 0], sizes = [1, 32], strides = [1, 1]} : vector<1x96xf32> to vector<1x32xf32>
    %68 = vector.extract_strided_slice %64 {offsets = [0, 32], sizes = [1, 32], strides = [1, 1]} : vector<1x96xf32> to vector<1x32xf32>
    %69 = vector.extract_strided_slice %64 {offsets = [0, 64], sizes = [1, 32], strides = [1, 1]} : vector<1x96xf32> to vector<1x32xf32>
    %70 = arith.mulf %68, %53 : vector<1x32xf32>
    %71 = arith.mulf %67, %66 : vector<1x32xf32>
    %72 = arith.addf %70, %71 : vector<1x32xf32>
    %73 = math.tanh %72 : vector<1x32xf32>
    %74 = arith.mulf %69, %73 : vector<1x32xf32>
    %c2_26 = arith.constant 2 : index
    %c0_27 = arith.constant 0 : index
    %75 = vector.load %arg5[%c2_26, %c0_27] : memref<8x256xf32, #tpu.memory_space<vmem>>, vector<1x128xf32>
    %cst_28 = arith.constant dense<0.000000e+00> : vector<1x128xf32>
    %76 = tpu.matmul %74, %41, %cst_28 {dimension_numbers = #tpu.dot_dimension_numbers<[1], [0], [0], [1], [0, 0, 1, 1], [], []>} : vector<1x32xf32>, vector<32x128xf32>, vector<1x128xf32> -> vector<1x128xf32>
    %77 = arith.addf %75, %76 : vector<1x128xf32>
    %78 = vector.extract_strided_slice %77 {offsets = [0, 0], sizes = [1, 96], strides = [1, 1]} : vector<1x128xf32> to vector<1x96xf32>
    %79 = arith.negf %78 : vector<1x96xf32>
    %80 = math.exp %79 : vector<1x96xf32>
    %cst_29 = arith.constant 1.000000e+00 : f32
    %81 = vector.broadcast %cst_29 : f32 to vector<1x96xf32>
    %82 = arith.addf %81, %80 : vector<1x96xf32>
    %83 = arith.divf %81, %82 : vector<1x96xf32>
    %84 = vector.extract_strided_slice %77 {offsets = [0, 96], sizes = [1, 32], strides = [1, 1]} : vector<1x128xf32> to vector<1x32xf32>
    %85 = math.tanh %84 : vector<1x32xf32>
    %86 = vector.extract_strided_slice %83 {offsets = [0, 0], sizes = [1, 32], strides = [1, 1]} : vector<1x96xf32> to vector<1x32xf32>
    %87 = vector.extract_strided_slice %83 {offsets = [0, 32], sizes = [1, 32], strides = [1, 1]} : vector<1x96xf32> to vector<1x32xf32>
    %88 = vector.extract_strided_slice %83 {offsets = [0, 64], sizes = [1, 32], strides = [1, 1]} : vector<1x96xf32> to vector<1x32xf32>
    %89 = arith.mulf %87, %72 : vector<1x32xf32>
    %90 = arith.mulf %86, %85 : vector<1x32xf32>
    %91 = arith.addf %89, %90 : vector<1x32xf32>
    %92 = math.tanh %91 : vector<1x32xf32>
    %93 = arith.mulf %88, %92 : vector<1x32xf32>
    %c3_30 = arith.constant 3 : index
    %c0_31 = arith.constant 0 : index
    %94 = vector.load %arg5[%c3_30, %c0_31] : memref<8x256xf32, #tpu.memory_space<vmem>>, vector<1x128xf32>
    %cst_32 = arith.constant dense<0.000000e+00> : vector<1x128xf32>
    %95 = tpu.matmul %93, %41, %cst_32 {dimension_numbers = #tpu.dot_dimension_numbers<[1], [0], [0], [1], [0, 0, 1, 1], [], []>} : vector<1x32xf32>, vector<32x128xf32>, vector<1x128xf32> -> vector<1x128xf32>
    %96 = arith.addf %94, %95 : vector<1x128xf32>
    %97 = vector.extract_strided_slice %96 {offsets = [0, 0], sizes = [1, 96], strides = [1, 1]} : vector<1x128xf32> to vector<1x96xf32>
    %98 = arith.negf %97 : vector<1x96xf32>
    %99 = math.exp %98 : vector<1x96xf32>
    %cst_33 = arith.constant 1.000000e+00 : f32
    %100 = vector.broadcast %cst_33 : f32 to vector<1x96xf32>
    %101 = arith.addf %100, %99 : vector<1x96xf32>
    %102 = arith.divf %100, %101 : vector<1x96xf32>
    %103 = vector.extract_strided_slice %96 {offsets = [0, 96], sizes = [1, 32], strides = [1, 1]} : vector<1x128xf32> to vector<1x32xf32>
    %104 = math.tanh %103 : vector<1x32xf32>
    %105 = vector.extract_strided_slice %102 {offsets = [0, 0], sizes = [1, 32], strides = [1, 1]} : vector<1x96xf32> to vector<1x32xf32>
    %106 = vector.extract_strided_slice %102 {offsets = [0, 32], sizes = [1, 32], strides = [1, 1]} : vector<1x96xf32> to vector<1x32xf32>
    %107 = vector.extract_strided_slice %102 {offsets = [0, 64], sizes = [1, 32], strides = [1, 1]} : vector<1x96xf32> to vector<1x32xf32>
    %108 = arith.mulf %106, %91 : vector<1x32xf32>
    %109 = arith.mulf %105, %104 : vector<1x32xf32>
    %110 = arith.addf %108, %109 : vector<1x32xf32>
    %111 = math.tanh %110 : vector<1x32xf32>
    %112 = arith.mulf %107, %111 : vector<1x32xf32>
    %c4_34 = arith.constant 4 : index
    %c0_35 = arith.constant 0 : index
    %113 = vector.load %arg5[%c4_34, %c0_35] : memref<8x256xf32, #tpu.memory_space<vmem>>, vector<1x128xf32>
    %cst_36 = arith.constant dense<0.000000e+00> : vector<1x128xf32>
    %114 = tpu.matmul %112, %41, %cst_36 {dimension_numbers = #tpu.dot_dimension_numbers<[1], [0], [0], [1], [0, 0, 1, 1], [], []>} : vector<1x32xf32>, vector<32x128xf32>, vector<1x128xf32> -> vector<1x128xf32>
    %115 = arith.addf %113, %114 : vector<1x128xf32>
    %116 = vector.extract_strided_slice %115 {offsets = [0, 0], sizes = [1, 96], strides = [1, 1]} : vector<1x128xf32> to vector<1x96xf32>
    %117 = arith.negf %116 : vector<1x96xf32>
    %118 = math.exp %117 : vector<1x96xf32>
    %cst_37 = arith.constant 1.000000e+00 : f32
    %119 = vector.broadcast %cst_37 : f32 to vector<1x96xf32>
    %120 = arith.addf %119, %118 : vector<1x96xf32>
    %121 = arith.divf %119, %120 : vector<1x96xf32>
    %122 = vector.extract_strided_slice %115 {offsets = [0, 96], sizes = [1, 32], strides = [1, 1]} : vector<1x128xf32> to vector<1x32xf32>
    %123 = math.tanh %122 : vector<1x32xf32>
    %124 = vector.extract_strided_slice %121 {offsets = [0, 0], sizes = [1, 32], strides = [1, 1]} : vector<1x96xf32> to vector<1x32xf32>
    %125 = vector.extract_strided_slice %121 {offsets = [0, 32], sizes = [1, 32], strides = [1, 1]} : vector<1x96xf32> to vector<1x32xf32>
    %126 = vector.extract_strided_slice %121 {offsets = [0, 64], sizes = [1, 32], strides = [1, 1]} : vector<1x96xf32> to vector<1x32xf32>
    %127 = arith.mulf %125, %110 : vector<1x32xf32>
    %128 = arith.mulf %124, %123 : vector<1x32xf32>
    %129 = arith.addf %127, %128 : vector<1x32xf32>
    %130 = math.tanh %129 : vector<1x32xf32>
    %131 = arith.mulf %126, %130 : vector<1x32xf32>
    %c5_38 = arith.constant 5 : index
    %c0_39 = arith.constant 0 : index
    %132 = vector.load %arg5[%c5_38, %c0_39] : memref<8x256xf32, #tpu.memory_space<vmem>>, vector<1x128xf32>
    %cst_40 = arith.constant dense<0.000000e+00> : vector<1x128xf32>
    %133 = tpu.matmul %131, %41, %cst_40 {dimension_numbers = #tpu.dot_dimension_numbers<[1], [0], [0], [1], [0, 0, 1, 1], [], []>} : vector<1x32xf32>, vector<32x128xf32>, vector<1x128xf32> -> vector<1x128xf32>
    %134 = arith.addf %132, %133 : vector<1x128xf32>
    %135 = vector.extract_strided_slice %134 {offsets = [0, 0], sizes = [1, 96], strides = [1, 1]} : vector<1x128xf32> to vector<1x96xf32>
    %136 = arith.negf %135 : vector<1x96xf32>
    %137 = math.exp %136 : vector<1x96xf32>
    %cst_41 = arith.constant 1.000000e+00 : f32
    %138 = vector.broadcast %cst_41 : f32 to vector<1x96xf32>
    %139 = arith.addf %138, %137 : vector<1x96xf32>
    %140 = arith.divf %138, %139 : vector<1x96xf32>
    %141 = vector.extract_strided_slice %134 {offsets = [0, 96], sizes = [1, 32], strides = [1, 1]} : vector<1x128xf32> to vector<1x32xf32>
    %142 = math.tanh %141 : vector<1x32xf32>
    %143 = vector.extract_strided_slice %140 {offsets = [0, 0], sizes = [1, 32], strides = [1, 1]} : vector<1x96xf32> to vector<1x32xf32>
    %144 = vector.extract_strided_slice %140 {offsets = [0, 32], sizes = [1, 32], strides = [1, 1]} : vector<1x96xf32> to vector<1x32xf32>
    %145 = vector.extract_strided_slice %140 {offsets = [0, 64], sizes = [1, 32], strides = [1, 1]} : vector<1x96xf32> to vector<1x32xf32>
    %146 = arith.mulf %144, %129 : vector<1x32xf32>
    %147 = arith.mulf %143, %142 : vector<1x32xf32>
    %148 = arith.addf %146, %147 : vector<1x32xf32>
    %149 = math.tanh %148 : vector<1x32xf32>
    %150 = arith.mulf %145, %149 : vector<1x32xf32>
    %c6_42 = arith.constant 6 : index
    %c0_43 = arith.constant 0 : index
    %151 = vector.load %arg5[%c6_42, %c0_43] : memref<8x256xf32, #tpu.memory_space<vmem>>, vector<1x128xf32>
    %cst_44 = arith.constant dense<0.000000e+00> : vector<1x128xf32>
    %152 = tpu.matmul %150, %41, %cst_44 {dimension_numbers = #tpu.dot_dimension_numbers<[1], [0], [0], [1], [0, 0, 1, 1], [], []>} : vector<1x32xf32>, vector<32x128xf32>, vector<1x128xf32> -> vector<1x128xf32>
    %153 = arith.addf %151, %152 : vector<1x128xf32>
    %154 = vector.extract_strided_slice %153 {offsets = [0, 0], sizes = [1, 96], strides = [1, 1]} : vector<1x128xf32> to vector<1x96xf32>
    %155 = arith.negf %154 : vector<1x96xf32>
    %156 = math.exp %155 : vector<1x96xf32>
    %cst_45 = arith.constant 1.000000e+00 : f32
    %157 = vector.broadcast %cst_45 : f32 to vector<1x96xf32>
    %158 = arith.addf %157, %156 : vector<1x96xf32>
    %159 = arith.divf %157, %158 : vector<1x96xf32>
    %160 = vector.extract_strided_slice %153 {offsets = [0, 96], sizes = [1, 32], strides = [1, 1]} : vector<1x128xf32> to vector<1x32xf32>
    %161 = math.tanh %160 : vector<1x32xf32>
    %162 = vector.extract_strided_slice %159 {offsets = [0, 0], sizes = [1, 32], strides = [1, 1]} : vector<1x96xf32> to vector<1x32xf32>
    %163 = vector.extract_strided_slice %159 {offsets = [0, 32], sizes = [1, 32], strides = [1, 1]} : vector<1x96xf32> to vector<1x32xf32>
    %164 = vector.extract_strided_slice %159 {offsets = [0, 64], sizes = [1, 32], strides = [1, 1]} : vector<1x96xf32> to vector<1x32xf32>
    %165 = arith.mulf %163, %148 : vector<1x32xf32>
    %166 = arith.mulf %162, %161 : vector<1x32xf32>
    %167 = arith.addf %165, %166 : vector<1x32xf32>
    %168 = math.tanh %167 : vector<1x32xf32>
    %169 = arith.mulf %164, %168 : vector<1x32xf32>
    %c7_46 = arith.constant 7 : index
    %c0_47 = arith.constant 0 : index
    %170 = vector.load %arg5[%c7_46, %c0_47] : memref<8x256xf32, #tpu.memory_space<vmem>>, vector<1x128xf32>
    %cst_48 = arith.constant dense<0.000000e+00> : vector<1x128xf32>
    %171 = tpu.matmul %169, %41, %cst_48 {dimension_numbers = #tpu.dot_dimension_numbers<[1], [0], [0], [1], [0, 0, 1, 1], [], []>} : vector<1x32xf32>, vector<32x128xf32>, vector<1x128xf32> -> vector<1x128xf32>
    %172 = arith.addf %170, %171 : vector<1x128xf32>
    %173 = vector.extract_strided_slice %172 {offsets = [0, 0], sizes = [1, 96], strides = [1, 1]} : vector<1x128xf32> to vector<1x96xf32>
    %174 = arith.negf %173 : vector<1x96xf32>
    %175 = math.exp %174 : vector<1x96xf32>
    %cst_49 = arith.constant 1.000000e+00 : f32
    %176 = vector.broadcast %cst_49 : f32 to vector<1x96xf32>
    %177 = arith.addf %176, %175 : vector<1x96xf32>
    %178 = arith.divf %176, %177 : vector<1x96xf32>
    %179 = vector.extract_strided_slice %172 {offsets = [0, 96], sizes = [1, 32], strides = [1, 1]} : vector<1x128xf32> to vector<1x32xf32>
    %180 = math.tanh %179 : vector<1x32xf32>
    %181 = vector.extract_strided_slice %178 {offsets = [0, 0], sizes = [1, 32], strides = [1, 1]} : vector<1x96xf32> to vector<1x32xf32>
    %182 = vector.extract_strided_slice %178 {offsets = [0, 32], sizes = [1, 32], strides = [1, 1]} : vector<1x96xf32> to vector<1x32xf32>
    %183 = vector.extract_strided_slice %178 {offsets = [0, 64], sizes = [1, 32], strides = [1, 1]} : vector<1x96xf32> to vector<1x32xf32>
    %184 = arith.mulf %182, %167 : vector<1x32xf32>
    %185 = arith.mulf %181, %180 : vector<1x32xf32>
    %186 = arith.addf %184, %185 : vector<1x32xf32>
    %187 = math.tanh %186 : vector<1x32xf32>
    %188 = arith.mulf %183, %187 : vector<1x32xf32>
    %c7_50 = arith.constant 7 : index
    %c128 = arith.constant 128 : index
    %189 = vector.load %arg5[%c7_50, %c128] : memref<8x256xf32, #tpu.memory_space<vmem>>, vector<1x128xf32>
    %190 = vector.extract_strided_slice %189 {offsets = [0, 0], sizes = [1, 96], strides = [1, 1]} : vector<1x128xf32> to vector<1x96xf32>
    %191 = arith.negf %190 : vector<1x96xf32>
    %192 = math.exp %191 : vector<1x96xf32>
    %cst_51 = arith.constant 1.000000e+00 : f32
    %193 = vector.broadcast %cst_51 : f32 to vector<1x96xf32>
    %194 = arith.addf %193, %192 : vector<1x96xf32>
    %195 = arith.divf %193, %194 : vector<1x96xf32>
    %196 = vector.extract_strided_slice %189 {offsets = [0, 96], sizes = [1, 32], strides = [1, 1]} : vector<1x128xf32> to vector<1x32xf32>
    %197 = math.tanh %196 : vector<1x32xf32>
    %198 = vector.extract_strided_slice %195 {offsets = [0, 0], sizes = [1, 32], strides = [1, 1]} : vector<1x96xf32> to vector<1x32xf32>
    %199 = vector.extract_strided_slice %195 {offsets = [0, 64], sizes = [1, 32], strides = [1, 1]} : vector<1x96xf32> to vector<1x32xf32>
    %200 = arith.mulf %198, %197 : vector<1x32xf32>
    %201 = math.tanh %200 : vector<1x32xf32>
    %202 = arith.mulf %199, %201 : vector<1x32xf32>
    %c96 = arith.constant 96 : index
    %c0_52 = arith.constant 0 : index
    %203 = vector.load %arg3[%c96, %c0_52] : memref<168x256xf32, #tpu.memory_space<vmem>>, vector<32x128xf32>
    %cst_53 = arith.constant dense<0.000000e+00> : vector<1x128xf32>
    %204 = tpu.matmul %188, %203, %cst_53 {dimension_numbers = #tpu.dot_dimension_numbers<[1], [0], [0], [1], [0, 0, 1, 1], [], []>} : vector<1x32xf32>, vector<32x128xf32>, vector<1x128xf32> -> vector<1x128xf32>
    %c128_54 = arith.constant 128 : index
    %c0_55 = arith.constant 0 : index
    %205 = vector.load %arg3[%c128_54, %c0_55] : memref<168x256xf32, #tpu.memory_space<vmem>>, vector<32x128xf32>
    %cst_56 = arith.constant dense<0.000000e+00> : vector<1x128xf32>
    %206 = tpu.matmul %202, %205, %cst_56 {dimension_numbers = #tpu.dot_dimension_numbers<[1], [0], [0], [1], [0, 0, 1, 1], [], []>} : vector<1x32xf32>, vector<32x128xf32>, vector<1x128xf32> -> vector<1x128xf32>
    %207 = arith.addf %204, %206 : vector<1x128xf32>
    %c162 = arith.constant 162 : index
    %c0_57 = arith.constant 0 : index
    %208 = vector.load %arg3[%c162, %c0_57] : memref<168x256xf32, #tpu.memory_space<vmem>>, vector<1x128xf32>
    %209 = arith.addf %207, %208 : vector<1x128xf32>
    %c0_58 = arith.constant 0 : index
    %c0_59 = arith.constant 0 : index
    %210 = vector.load %arg4[%c0_58, %c0_59] : memref<1x128xf32, #tpu.memory_space<vmem>>, vector<1x128xf32>
    tpu.vector_store %arg4[%c0_58, %c0_59], %209 {strides = array<i32>} : memref<1x128xf32, #tpu.memory_space<vmem>>, vector<1x128xf32>,
    return
  }
}

</mosaic_0001>

<bundles_post_ra>
// kernel: bilstm_gnn_forward.1
= control target key start
LH: loop header
LB: loop body
LE: loop exit
PB: predicated region body
PF: predicated region fallthrough
CT: control target
= control target key end

     0   :  { %10 = vsyncpa [#allocation7], 0  ;;  %s1766_s0 = inlined_call_operand.vmem [shape: s32[8], index: 0, kind: input, shape index: {}]   ;;  %s1767_s1 = inlined_call_operand.<no memory space> [shape: f32[1], index: 1, kind: input, shape index: {}]   ;;  %s1768_s2 = inlined_call_operand.vmem [shape: f32[50,32], index: 2, kind: input, shape index: {}]   ;;  %s1769_s3 = inlined_call_operand.hbm [shape: f32[168,256], index: 3, kind: input, shape index: {}]   ;;  %s1770_s4 = inlined_call_operand.hbm [shape: f32[1,128], index: 4, kind: output, shape index: {}]  }
   0x1   :  { %11 = vsyncpa [#allocation5], 0 }
   0x2   :  { %12 = vsyncpa [#allocation6], 0  ;;  %s19_s17 = sshll.u32 %s1766_s0, 4  ;;  %s20_s17 = int_to_ptr.vmem [resolvable:$true] %s19_s17 }
   0x3   :  { %s1492_s18 = scalar_lea.vmem %s20_s17, 16  ;;  %p1497_p1 = scmp.lt.s32.totalorder %s20_s17, %s20_s17 }
   0x4   :  { %p1493_p0 = scmp.ne.s32.totalorder %s20_s17, %s1492_s18  ;;  %p1498_p2 = scmp.lt.s32.totalorder %s1492_s18, %s1492_s18 }
   0x6   :  { %p1499_p3 = por %p1498_p2, %p1497_p1 }
   0x8   :  { %p1500_p4 = pnand %p1499_p3, %p1493_p0 }
   0xa   :  { %1503 = shalt.err (!%p1500_p4)
}
   0xb   :  { %s1550_s19 = smov [#allocation4]   ;;  %s1551_s20 = smov [#allocation8]  }
   0xc   :  { %22 = dma.vmem_to_smem %s20_s17, 16, %s1550_s19, [#allocation7]  }
   0xd   :  { %s32_s21 = sshll.u32 %s1551_s20, 4  ;;  %s33_s21 = int_to_ptr.vmem [resolvable:$true] %s32_s21 }
   0xe   :  { %s1512_s22 = scalar_lea.vmem %s33_s21, 5376  ;;  %p1517_p6 = scmp.lt.s32.totalorder %s33_s21, %s33_s21 }
   0xf   :  { %p1513_p5 = scmp.ne.s32.totalorder %s33_s21, %s1512_s22  ;;  %p1518_p7 = scmp.lt.s32.totalorder %s1512_s22, %s1512_s22 }
  0x11   :  { %p1519_p8 = por %p1518_p7, %p1517_p6 }
  0x13   :  { %p1520_p9 = pnand %p1519_p8, %p1513_p5 }
  0x15   :  { %1523 = shalt.err (!%p1520_p9)
}
  0x16   :  { %s1552_s0 = smov 256   ;;  %s1553_s23 = smov 16  }
  0x17   :  { %38 = dma.hbm_to_vmem [thread:$0]  %s1769_s3, 5376, %s33_s21, [#allocation5], %s1552_s0, %s1552_s0, %s1553_s23  }
  0x18   :  { %1544 = dma.done.wait [#allocation7], 16  }
  0x19   :  { %1545 = vsyncadd [#allocation7], 4294967280 }
  0x1a   :  { %1546 = dma.done.wait [#allocation5], 5376  }
  0x1b   :  { %1547 = vsyncadd [#allocation5], 4294961920 }
  0x1c   :  { %45 = sfence }
  0x1d   :  { %v108_v0 = vld [vmem:[#allocation8 + $0x30] sm:$0xff]  ;;  %v1554_v1 = vmov 0.0   ;;  %v107_v2 = vld [vmem:[#allocation8 + $0x20] sm:$0xff]  ;;  %vm1555_vm0 = vmmov 0   ;;  %s46_s26 = sld [smem:[#allocation4]]  ;;  %v196_v4 = vld [vmem:[#allocation8 + $0x78] sm:$0xff]  ;;  %v184_v35 = vstv %s1767_s1  ;;  %v200_v42 = vlaneseq }
  0x1e   :  { %1301 = vmatprep.subr.mxu0 %v1554_v1  ;;  %1309 = vmatprep.mubr.msk.f32.mxu0 %vm1555_vm0, %v1554_v1  ;;  %s1224_s27 = sld [smem:[#allocation4 + $0x1]]  ;;  %v106_v3 = vld [vmem:[#allocation8 + $0x10] sm:$0xff]  ;;  %v105_v5 = vld [vmem:[#allocation8] sm:$0xff]  ;;  %vm91_vm1 = vcmask 1040384   ;;  %vm93_vm2 = vcmask 1041408   ;;  %vm95_vm3 = vcmask 1042432  }
  0x1f   :  { %1302 = vmatpush3.msra.mxu0 %v108_v0  ;;  %277 = vmatprep.mubr.f32.mxu1 %v1554_v1  ;;  %s1225_s3 = sld [smem:[#allocation4 + $0x2]]  ;;  %vm97_vm4 = vcmask 1043456   ;;  %vm99_vm5 = vcmask 1044480   ;;  %vm101_vm6 = vcmask 1045504   ;;  %vm103_vm7 = vcmask 1046528   ;;  %v195_v28 = vld [vmem:[#allocation8 + $0x70] sm:$0xff] }
  0x20   :  { %1303 = vmatprep.subr.mxu0 %v1554_v1  ;;  %s1226_s28 = sld [smem:[#allocation4 + $0x3]]  ;;  %237 = vmatprep.subr.mxu1 %v196_v4  ;;  %vm109_vm8 = vcmask 261120   ;;  %v194_v29 = vld [vmem:[#allocation8 + $0x68] sm:$0xff]  ;;  %v193_v30 = vld [vmem:[#allocation8 + $0x60] sm:$0xff]  ;;  %v192_v31 = vld [vmem:[#allocation8 + $0x58] sm:$0xff]  ;;  %v201_v43 = vshrl.u32 %v200_v42, 7 }
  0x21   :  { %1304 = vmatpush3.msra.mxu0 %v107_v2  ;;  %s1227_s29 = sld [smem:[#allocation4 + $0x4]]  ;;  %238 = vmatpush1.msra.mxu1 %v195_v28  ;;  %v191_v32 = vld [vmem:[#allocation8 + $0x50] sm:$0xff]  ;;  %v190_v33 = vld [vmem:[#allocation8 + $0x48] sm:$0xff]  ;;  %v189_v34 = vld [vmem:[#allocation8 + $0x40] sm:$0xff]  ;;  %s1556_s1 = smov 32  }
  0x22   :  { %1305 = vmatprep.subr.mxu0 %v1554_v1  ;;  %s1228_s30 = sld [smem:[#allocation4 + $0x5]]  ;;  %239 = vmatprep.subr.mxu1 %v194_v29  ;;  %v186_v37 = vld [vmem:[#allocation8 + $0x140] ss:$0 sm:$0xff]  ;;  %v202_v44 = vsub.s32 0, %v201_v43  ;;  %v206_v46 = vsub.s32 1, %v201_v43  ;;  %v1636_v61 = vld [vmem:[#allocation8 + $0xb0] sm:$0xff] }
  0x23   :  { %1306 = vmatpush3.msra.mxu0 %v106_v3  ;;  %s47_s7 = scalar_lea.vmem %s1768_s2, %s46_s26  ;;  %s1229_s8 = sld [smem:[#allocation4 + $0x6]]  ;;  %240 = vmatpush1.msra.mxu1 %v193_v30  ;;  %v198_v45 = vld [vmem:[#allocation8 + $0x141] ss:$8 sm:$0x3]  ;;  %v1643_v63 = vld [vmem:[#allocation8 + $0x90] sm:$0xff] }
  0x24   :  { %1307 = vmatprep.subr.mxu0 %v1554_v1  ;;  %s50_s11 = scalar_lea.vmem %s1768_s2, %s1224_s27  ;;  %s1603_s12 = sld [smem:[#allocation4 + $0x7]]  ;;  %v48_v6 = vld [vmem:[%s47_s7] sm:$0x1]  ;;  %241 = vmatprep.subr.mxu1 %v192_v31  ;;  %v203_v47 = vrot.slane %v198_v45, %v202_v44  ;;  %v207_v48 = vrot.slane %v198_v45, %v206_v46  ;;  %v1638_v62 = vld [vmem:[#allocation8 + $0xa0] sm:$0xff] }
  0x25   :  { %1308 = vmatpush3.msra.mxu0 %v105_v5  ;;  %v51_v7 = vld [vmem:[%s50_s11] sm:$0x1]  ;;  %s53_s15 = scalar_lea.vmem %s1768_s2, %s1225_s3  ;;  %242 = vmatpush1.msra.mxu1 %v191_v32  ;;  %v1649_v0 = vld [vmem:[#allocation8 + $0x80] sm:$0xff]  ;;  %s1558_s5 = smov [#allocation9]  }
  0x26   :  { %1312 = vmatprep.subr.mxu0 %v1554_v1  ;;  %v54_v8 = vld [vmem:[%s53_s15] sm:$0x1]  ;;  %s56_s18 = scalar_lea.vmem %s1768_s2, %s1226_s28  ;;  %v71_v9 = vrot.slane %v51_v7, 7  ;;  %243 = vmatprep.subr.mxu1 %v190_v33  ;;  %s1206_s6 = sshll.u32 %s1558_s5, 4  ;;  %s1207_s6 = int_to_ptr.vmem [resolvable:$true] %s1206_s6 }
  0x27   :  { %v57_v10 = vld [vmem:[%s56_s18] sm:$0x1]  ;;  %s59_s21 = scalar_lea.vmem %s1768_s2, %s1227_s29  ;;  %v74_v11 = vrot.slane %v54_v8, 6  ;;  %244 = vmatpush1.msra.mxu1 %v189_v34  ;;  %s1524_s7 = scalar_lea.vmem %s1207_s6, 16 }
  0x28   :  { %v60_v12 = vld [vmem:[%s59_s21] sm:$0x1]  ;;  %s62_s23 = scalar_lea.vmem %s1768_s2, %s1228_s30  ;;  %v77_v13 = vrot.slane %v57_v10, 5  ;;  %v92_v14 = vsel %vm91_vm1, %v48_v6, %v71_v9  ;;  %1323 = vmatprep.subr.mxu1 %v1554_v1  ;;  %s1557_s30 = smov 64  }
  0x29   :  { %v63_v15 = vld [vmem:[%s62_s23] sm:$0x1]  ;;  %s65_s26 = scalar_lea.vmem %s1768_s2, %s1229_s8  ;;  %v80_v16 = vrot.slane %v60_v12, 4  ;;  %v94_v17 = vsel %vm93_vm2, %v92_v14, %v74_v11  ;;  %p1525_p10 = scmp.ne.s32.totalorder %s1207_s6, %s1524_s7 }
  0x2a   :  { %v66_v18 = vld [vmem:[%s65_s26] sm:$0x1]  ;;  %s68_s28 = scalar_lea.vmem %s1768_s2, %s1603_s12  ;;  %v83_v19 = vrot.slane %v63_v15, 3  ;;  %v96_v20 = vsel %vm95_vm3, %v94_v17, %v77_v13  ;;  %s1528_s8 = scalar_lea.vmem %s1207_s6, 32 }
  0x2b   :  { %v69_v21 = vld [vmem:[%s68_s28] sm:$0x1]  ;;  %v86_v22 = vrot.slane %v66_v18, 2  ;;  %v98_v23 = vsel %vm97_vm4, %v96_v20, %v80_v16  ;;  %p1529_p11 = scmp.lt.s32.totalorder %s1207_s6, %s1207_s6  ;;  %p1530_p12 = scmp.lt.s32.totalorder %s1528_s8, %s1524_s7 }
  0x2c   :  { %v89_v24 = vrot.slane %v69_v21, 1  ;;  %v100_v25 = vsel %vm99_vm5, %v98_v23, %v83_v19 }
  0x2d   :  { %v102_v26 = vsel %vm101_vm6, %v100_v25, %v86_v22  ;;  %p1531_p13 = por %p1530_p12, %p1529_p11 }
  0x2e   :  { %v104_v27 = vsel %vm103_vm7, %v102_v26, %v89_v24 }
  0x2f   :  { %1310 = vmatmul.mubr.msk.f32.vlgmr.msra.gmra.mxu0 %vm109_vm8, %v104_v27  ;;  %p1532_p0 = pnand %p1531_p13, %p1525_p10 }
  0x30   :  { %1320 = vmatprep.mubr.msk.f32.mxu0 %vm1555_vm0, %v1554_v1  ;;  %1313 = vmatpush3.msra.mxu0 %v1636_v61 }
  0x31   :  { %1314 = vmatprep.subr.mxu0 %v1554_v1 }
  0x32   :  { %1315 = vmatpush3.msra.mxu0 %v1638_v62 }
  0x33   :  { %1316 = vmatprep.subr.mxu0 %v1554_v1 }
  0x34   :  { %1317 = vmatpush3.msra.mxu0 %v1643_v63 }
  0x35   :  { %1318 = vmatprep.subr.mxu0 %v1554_v1 }
  0x36   :  { %1319 = vmatpush3.msra.mxu0 %v1649_v0 }
  0x37   :  { %1334 = vmatprep.subr.mxu0 %v1554_v1 }
  0xef   :  { %v179_v36 = vpop.f32.mrf.mxu0 }
  0xf0   :  { %v185_v38 = vmul.f32 %v184_v35, %v179_v36 }
  0xf1   :  { %v1311_v39 = vpop.f32.mrf.mxu0 }
  0xf2   :  { %v187_v40 = vadd.f32 %v186_v37, %v185_v38 }
  0xf4   :  { %v188_v41 = vmax.f32 %v187_v40, 0.0 }
  0xf6   :  { %1232 = vmatmul.mubr.msk.f32.vlgmr.msra.gmra.mxu1 %vm109_vm8, %v188_v41 }
  0xf7   :  { %1331 = vmatprep.mubr.msk.f32.mxu1 %vm1555_vm0, %v1554_v1  ;;  %1324 = vmatpush3.msra.mxu1 %v1636_v61 }
  0xf8   :  { %1325 = vmatprep.subr.mxu1 %v1554_v1 }
  0xf9   :  { %1326 = vmatpush3.msra.mxu1 %v1638_v62 }
  0xfa   :  { %1327 = vmatprep.subr.mxu1 %v1554_v1 }
  0xfb   :  { %1328 = vmatpush3.msra.mxu1 %v1643_v63 }
  0xfc   :  { %1329 = vmatprep.subr.mxu1 %v1554_v1 }
  0xfd   :  { %1330 = vmatpush3.msra.mxu1 %v1649_v0 }
  0xfe   :  { %1345 = vmatprep.subr.mxu1 %v1554_v1 }
 0x1b6   :  { %v279_v49 = vpop.f32.mrf.mxu1 }
 0x1b7   :  { %v280_v50 = vadd.f32 %v279_v49, %v203_v47 }
 0x1b8   :  { %v281_v51 = vpop.f32.mrf.mxu1 }
 0x1b9   :  { %284 = vst [vmem:[#allocation2] sm:$0xff] %v280_v50  ;;  %v282_v52 = vadd.f32 %v281_v51, %v207_v48 }
 0x1bb   :  { %285 = vst [vmem:[#allocation2 + $0x8] sm:$0xff] %v282_v52 }
 0x1c0   :  { %v290_v53 = vld [vmem:[#allocation2] ss:$0 sm:$0xff]  ;;  %v309_v6 = vld [vmem:[#allocation2 + $0x1] ss:$0 sm:$0xff]  ;;  %v414_v25 = vld [vmem:[#allocation2 + $0x2] ss:$0 sm:$0xff] }
 0x1c1   :  { %1420 = vtanh.f32 %v290_v53  ;;  %v1233_v55 = vmul.f32 -1.442695, %v290_v53  ;;  %v515_v43 = vld [vmem:[#allocation2 + $0x3] ss:$0 sm:$0xff] }
 0x1c3   :  { %1422 = vpow2.f32 %v1233_v55 }
 0x1ce   :  { %v1421_v54 = vpop.eup %1420 }
 0x1cf   :  { %299 = vrot.lane.b32.xlu0 %v1421_v54, %s1556_s1 }
 0x1d0   :  { %v1423_v56 = vpop.eup %1422 }
 0x1d1   :  { %v294_v57 = vadd.f32 1.0, %v1423_v56 }
 0x1d3   :  { %1424 = vrcp.f32 %v294_v57 }
 0x1e0   :  { %v1425_v58 = vpop.eup %1424 }
 0x241   :  { %v300_v59 = vpop.permute.xlu0 %299 }
 0x242   :  { %v302_v60 = vmul.f32 %v1425_v58, %v300_v59 }
 0x244   :  { %1426 = vtanh.f32 %v302_v60 }
 0x251   :  { %v1427_v2 = vpop.eup %1426 }
 0x252   :  { %305 = vrot.lane.b32.xlu0 %v1427_v2, %s1557_s30  ;;  %v616_v2 = vld [vmem:[#allocation2 + $0x4] ss:$0 sm:$0xff] }
 0x256   :  { %394 = vrot.lane.b32.xlu0 %v302_v60, %s1556_s1 }
 0x2c4   :  { %v306_v3 = vpop.permute.xlu0 %305 }
 0x2c5   :  { %v308_v4 = vmul.f32 %v1425_v58, %v306_v3 }
 0x2c7   :  { %311 = vrot.lane.b32.xlu1 %v308_v4, %s1557_s30 }
 0x2c8   :  { %v395_v17 = vpop.permute.xlu0 %394 }
 0x339   :  { %v312_v5 = vpop.permute.xlu1 %311 }
 0x33a   :  { %1321 = vmatmul.mubr.msk.f32.vlgmr.msra.gmra.mxu0 %vm109_vm8, %v312_v5 }
 0x33b   :  { %1335 = vmatpush3.msra.mxu0 %v1636_v61  ;;  %1342 = vmatprep.mubr.msk.f32.mxu0 %vm1555_vm0, %v1554_v1 }
 0x33c   :  { %1336 = vmatprep.subr.mxu0 %v1554_v1 }
 0x33d   :  { %1337 = vmatpush3.msra.mxu0 %v1638_v62 }
 0x33e   :  { %1338 = vmatprep.subr.mxu0 %v1554_v1 }
 0x33f   :  { %1339 = vmatpush3.msra.mxu0 %v1643_v63 }
 0x340   :  { %1340 = vmatprep.subr.mxu0 %v1554_v1 }
 0x341   :  { %1341 = vmatpush3.msra.mxu0 %v1649_v0 }
 0x342   :  { %1356 = vmatprep.subr.mxu0 %v1554_v1 }
 0x3fa   :  { %v381_v7 = vpop.f32.mrf.mxu0 }
 0x3fb   :  { %v385_v8 = vadd.f32 %v381_v7, %v309_v6 }
 0x3fc   :  { %v1322_v9 = vpop.f32.mrf.mxu0 }
 0x3fd   :  { %1428 = vtanh.f32 %v385_v8  ;;  %v1235_v11 = vmul.f32 -1.442695, %v385_v8 }
 0x3ff   :  { %1430 = vpow2.f32 %v1235_v11 }
 0x40a   :  { %v1429_v10 = vpop.eup %1428 }
 0x40b   :  { %399 = vrot.lane.b32.xlu1 %v1429_v10, %s1556_s1 }
 0x40c   :  { %v1431_v12 = vpop.eup %1430 }
 0x40d   :  { %v389_v13 = vadd.f32 1.0, %v1431_v12 }
 0x40f   :  { %1432 = vrcp.f32 %v389_v13 }
 0x41c   :  { %v1433_v14 = vpop.eup %1432 }
 0x41d   :  { %v397_v18 = vmul.f32 %v1433_v14, %v395_v17 }
 0x47d   :  { %v400_v15 = vpop.permute.xlu1 %399 }
 0x47e   :  { %v402_v16 = vmul.f32 %v1433_v14, %v400_v15 }
 0x480   :  { %404 = vrot.lane.b32.xlu1 %v402_v16, %s1556_s1 }
 0x4f2   :  { %v405_v19 = vpop.permute.xlu1 %404 }
 0x4f3   :  { %v407_v20 = vadd.f32 %v405_v19, %v397_v18 }
 0x4f5   :  { %1434 = vtanh.f32 %v407_v20 }
 0x502   :  { %v1435_v21 = vpop.eup %1434 }
 0x503   :  { %410 = vrot.lane.b32.xlu0 %v1435_v21, %s1556_s1 }
 0x575   :  { %v411_v22 = vpop.permute.xlu0 %410 }
 0x576   :  { %v413_v23 = vmul.f32 %v1433_v14, %v411_v22 }
 0x578   :  { %416 = vrot.lane.b32.xlu1 %v413_v23, %s1557_s30 }
 0x5ea   :  { %v417_v24 = vpop.permute.xlu1 %416 }
 0x5eb   :  { %1332 = vmatmul.mubr.msk.f32.vlgmr.msra.gmra.mxu1 %vm109_vm8, %v417_v24 }
 0x5ec   :  { %1346 = vmatpush3.msra.mxu1 %v1636_v61  ;;  %1353 = vmatprep.mubr.msk.f32.mxu1 %vm1555_vm0, %v1554_v1 }
 0x5ed   :  { %1347 = vmatprep.subr.mxu1 %v1554_v1 }
 0x5ee   :  { %1348 = vmatpush3.msra.mxu1 %v1638_v62 }
 0x5ef   :  { %1349 = vmatprep.subr.mxu1 %v1554_v1 }
 0x5f0   :  { %1350 = vmatpush3.msra.mxu1 %v1643_v63 }
 0x5f1   :  { %1351 = vmatprep.subr.mxu1 %v1554_v1 }
 0x5f2   :  { %1352 = vmatpush3.msra.mxu1 %v1649_v0 }
 0x5f3   :  { %1367 = vmatprep.subr.mxu1 %v1554_v1 }
 0x6ab   :  { %v486_v26 = vpop.f32.mrf.mxu1 }
 0x6ac   :  { %v490_v27 = vadd.f32 %v486_v26, %v414_v25 }
 0x6ad   :  { %v1333_v28 = vpop.f32.mrf.mxu1 }
 0x6ae   :  { %1436 = vtanh.f32 %v490_v27  ;;  %v1237_v30 = vmul.f32 -1.442695, %v490_v27 }
 0x6b0   :  { %1438 = vpow2.f32 %v1237_v30 }
 0x6bb   :  { %v1437_v29 = vpop.eup %1436 }
 0x6bc   :  { %500 = vrot.lane.b32.xlu0 %v1437_v29, %s1556_s1 }
 0x6bd   :  { %v1439_v31 = vpop.eup %1438 }
 0x6be   :  { %v494_v32 = vadd.f32 1.0, %v1439_v31 }
 0x6c0   :  { %1440 = vrcp.f32 %v494_v32 }
 0x6cd   :  { %v1441_v33 = vpop.eup %1440 }
 0x6ce   :  { %v498_v36 = vmul.f32 %v1441_v33, %v407_v20  ;;  %v717_v20 = vld [vmem:[#allocation2 + $0x5] ss:$0 sm:$0xff] }
 0x72e   :  { %v501_v34 = vpop.permute.xlu0 %500 }
 0x72f   :  { %v503_v35 = vmul.f32 %v1441_v33, %v501_v34  ;;  %v818_v34 = vld [vmem:[#allocation2 + $0x6] ss:$0 sm:$0xff] }
 0x731   :  { %505 = vrot.lane.b32.xlu1 %v503_v35, %s1556_s1 }
 0x7a3   :  { %v506_v37 = vpop.permute.xlu1 %505 }
 0x7a4   :  { %v508_v38 = vadd.f32 %v506_v37, %v498_v36 }
 0x7a6   :  { %1442 = vtanh.f32 %v508_v38 }
 0x7b3   :  { %v1443_v39 = vpop.eup %1442 }
 0x7b4   :  { %511 = vrot.lane.b32.xlu0 %v1443_v39, %s1556_s1 }
 0x826   :  { %v512_v40 = vpop.permute.xlu0 %511 }
 0x827   :  { %v514_v41 = vmul.f32 %v1441_v33, %v512_v40 }
 0x829   :  { %517 = vrot.lane.b32.xlu1 %v514_v41, %s1557_s30 }
 0x89b   :  { %v518_v42 = vpop.permute.xlu1 %517 }
 0x89c   :  { %1343 = vmatmul.mubr.msk.f32.vlgmr.msra.gmra.mxu0 %vm109_vm8, %v518_v42 }
 0x89d   :  { %1357 = vmatpush3.msra.mxu0 %v1636_v61  ;;  %1364 = vmatprep.mubr.msk.f32.mxu0 %vm1555_vm0, %v1554_v1 }
 0x89e   :  { %1358 = vmatprep.subr.mxu0 %v1554_v1 }
 0x89f   :  { %1359 = vmatpush3.msra.mxu0 %v1638_v62 }
 0x8a0   :  { %1360 = vmatprep.subr.mxu0 %v1554_v1 }
 0x8a1   :  { %1361 = vmatpush3.msra.mxu0 %v1643_v63 }
 0x8a2   :  { %1362 = vmatprep.subr.mxu0 %v1554_v1 }
 0x8a3   :  { %1363 = vmatpush3.msra.mxu0 %v1649_v0 }
 0x8a4   :  { %1378 = vmatprep.subr.mxu0 %v1554_v1 }
 0x95c   :  { %v587_v44 = vpop.f32.mrf.mxu0 }
 0x95d   :  { %v591_v45 = vadd.f32 %v587_v44, %v515_v43 }
 0x95e   :  { %v1344_v46 = vpop.f32.mrf.mxu0 }
 0x95f   :  { %1444 = vtanh.f32 %v591_v45  ;;  %v1239_v48 = vmul.f32 -1.442695, %v591_v45 }
 0x961   :  { %1446 = vpow2.f32 %v1239_v48 }
 0x96c   :  { %v1445_v47 = vpop.eup %1444 }
 0x96d   :  { %601 = vrot.lane.b32.xlu0 %v1445_v47, %s1556_s1 }
 0x96e   :  { %v1447_v49 = vpop.eup %1446 }
 0x96f   :  { %v595_v50 = vadd.f32 1.0, %v1447_v49 }
 0x971   :  { %1448 = vrcp.f32 %v595_v50 }
 0x97e   :  { %v1449_v51 = vpop.eup %1448 }
 0x97f   :  { %v599_v54 = vmul.f32 %v1449_v51, %v508_v38 }
 0x9df   :  { %v602_v52 = vpop.permute.xlu0 %601 }
 0x9e0   :  { %v604_v53 = vmul.f32 %v1449_v51, %v602_v52  ;;  %v919_v52 = vld [vmem:[#allocation2 + $0x7] ss:$0 sm:$0xff] }
 0x9e2   :  { %606 = vrot.lane.b32.xlu1 %v604_v53, %s1556_s1 }
 0xa54   :  { %v607_v55 = vpop.permute.xlu1 %606 }
 0xa55   :  { %v609_v56 = vadd.f32 %v607_v55, %v599_v54 }
 0xa57   :  { %1450 = vtanh.f32 %v609_v56 }
 0xa64   :  { %v1451_v57 = vpop.eup %1450 }
 0xa65   :  { %612 = vrot.lane.b32.xlu0 %v1451_v57, %s1556_s1 }
 0xad7   :  { %v613_v58 = vpop.permute.xlu0 %612 }
 0xad8   :  { %v615_v59 = vmul.f32 %v1449_v51, %v613_v58 }
 0xada   :  { %618 = vrot.lane.b32.xlu1 %v615_v59, %s1557_s30 }
 0xb4c   :  { %v619_v60 = vpop.permute.xlu1 %618 }
 0xb4d   :  { %1354 = vmatmul.mubr.msk.f32.vlgmr.msra.gmra.mxu1 %vm109_vm8, %v619_v60 }
 0xb4e   :  { %1368 = vmatpush3.msra.mxu1 %v1636_v61  ;;  %1375 = vmatprep.mubr.msk.f32.mxu1 %vm1555_vm0, %v1554_v1 }
 0xb4f   :  { %1369 = vmatprep.subr.mxu1 %v1554_v1 }
 0xb50   :  { %1370 = vmatpush3.msra.mxu1 %v1638_v62 }
 0xb51   :  { %1371 = vmatprep.subr.mxu1 %v1554_v1 }
 0xb52   :  { %1372 = vmatpush3.msra.mxu1 %v1643_v63 }
 0xb53   :  { %1373 = vmatprep.subr.mxu1 %v1554_v1 }
 0xb54   :  { %1374 = vmatpush3.msra.mxu1 %v1649_v0 }
 0xb55   :  { %1389 = vmatprep.subr.mxu1 %v1554_v1 }
 0xc0d   :  { %v688_v3 = vpop.f32.mrf.mxu1 }
 0xc0e   :  { %v692_v4 = vadd.f32 %v688_v3, %v616_v2 }
 0xc0f   :  { %v1355_v5 = vpop.f32.mrf.mxu1 }
 0xc10   :  { %1452 = vtanh.f32 %v692_v4  ;;  %v1241_v7 = vmul.f32 -1.442695, %v692_v4 }
 0xc12   :  { %1454 = vpow2.f32 %v1241_v7 }
 0xc1d   :  { %v1453_v6 = vpop.eup %1452 }
 0xc1e   :  { %702 = vrot.lane.b32.xlu0 %v1453_v6, %s1556_s1 }
 0xc1f   :  { %v1455_v8 = vpop.eup %1454 }
 0xc20   :  { %v696_v9 = vadd.f32 1.0, %v1455_v8 }
 0xc22   :  { %1456 = vrcp.f32 %v696_v9 }
 0xc2f   :  { %v1457_v10 = vpop.eup %1456 }
 0xc30   :  { %v700_v13 = vmul.f32 %v1457_v10, %v609_v56  ;;  %v1020_v56 = vld [vmem:[#allocation2 + $0xf] ss:$0 sm:$0xff] }
 0xc31   :  { %v1248_v60 = vmul.f32 -1.442695, %v1020_v56 }
 0xc90   :  { %v703_v11 = vpop.permute.xlu0 %702 }
 0xc91   :  { %v705_v12 = vmul.f32 %v1457_v10, %v703_v11 }
 0xc93   :  { %707 = vrot.lane.b32.xlu1 %v705_v12, %s1556_s1  ;;  %v1046_v12 = vld [vmem:[#allocation8 + $0x130] sm:$0xff] }
 0xd05   :  { %v708_v14 = vpop.permute.xlu1 %707 }
 0xd06   :  { %v710_v15 = vadd.f32 %v708_v14, %v700_v13  ;;  %v1045_v13 = vld [vmem:[#allocation8 + $0x120] sm:$0xff] }
 0xd08   :  { %1458 = vtanh.f32 %v710_v15 }
 0xd15   :  { %v1459_v16 = vpop.eup %1458 }
 0xd16   :  { %713 = vrot.lane.b32.xlu0 %v1459_v16, %s1556_s1 }
 0xd88   :  { %v714_v17 = vpop.permute.xlu0 %713 }
 0xd89   :  { %v716_v18 = vmul.f32 %v1457_v10, %v714_v17 }
 0xd8b   :  { %719 = vrot.lane.b32.xlu1 %v716_v18, %s1557_s30  ;;  %v1044_v18 = vld [vmem:[#allocation8 + $0x110] sm:$0xff] }
 0xdfd   :  { %v720_v19 = vpop.permute.xlu1 %719 }
 0xdfe   :  { %1365 = vmatmul.mubr.msk.f32.vlgmr.msra.gmra.mxu0 %vm109_vm8, %v720_v19  ;;  %v1043_v19 = vld [vmem:[#allocation8 + $0x100] sm:$0xff] }
 0xdff   :  { %1379 = vmatpush3.msra.mxu0 %v1636_v61  ;;  %1386 = vmatprep.mubr.msk.f32.mxu0 %vm1555_vm0, %v1554_v1 }
 0xe00   :  { %1380 = vmatprep.subr.mxu0 %v1554_v1 }
 0xe01   :  { %1381 = vmatpush3.msra.mxu0 %v1638_v62 }
 0xe02   :  { %1382 = vmatprep.subr.mxu0 %v1554_v1 }
 0xe03   :  { %1383 = vmatpush3.msra.mxu0 %v1643_v63 }
 0xe04   :  { %1384 = vmatprep.subr.mxu0 %v1554_v1 }
 0xe05   :  { %1385 = vmatpush3.msra.mxu0 %v1649_v0 }
 0xe06   :  { %1400 = vmatprep.subr.mxu0 %v1554_v1 }
 0xebe   :  { %v789_v21 = vpop.f32.mrf.mxu0 }
 0xebf   :  { %v793_v61 = vadd.f32 %v789_v21, %v717_v20  ;;  %v1042_v20 = vld [vmem:[#allocation8 + $0xf0] sm:$0xff]  ;;  %v1041_v21 = vld [vmem:[#allocation8 + $0xe0] sm:$0xff] }
 0xec0   :  { %v1366_v22 = vpop.f32.mrf.mxu0 }
 0xec1   :  { %1460 = vtanh.f32 %v793_v61  ;;  %v1243_v24 = vmul.f32 -1.442695, %v793_v61  ;;  %v1040_v61 = vld [vmem:[#allocation8 + $0xd0] sm:$0xff]  ;;  %v1039_v22 = vld [vmem:[#allocation8 + $0xc0] sm:$0xff] }
 0xec3   :  { %1462 = vpow2.f32 %v1243_v24 }
 0xece   :  { %v1461_v23 = vpop.eup %1460 }
 0xecf   :  { %803 = vrot.lane.b32.xlu0 %v1461_v23, %s1556_s1 }
 0xed0   :  { %v1463_v62 = vpop.eup %1462 }
 0xed1   :  { %v797_v25 = vadd.f32 1.0, %v1463_v62 }
 0xed3   :  { %1464 = vrcp.f32 %v797_v25 }
 0xee0   :  { %v1465_v63 = vpop.eup %1464 }
 0xee1   :  { %v801_v0 = vmul.f32 %v1465_v63, %v710_v15 }
 0xf41   :  { %v804_v26 = vpop.permute.xlu0 %803 }
 0xf42   :  { %v806_v27 = vmul.f32 %v1465_v63, %v804_v26 }
 0xf44   :  { %808 = vrot.lane.b32.xlu1 %v806_v27, %s1556_s1 }
 0xfb6   :  { %v809_v28 = vpop.permute.xlu1 %808 }
 0xfb7   :  { %v811_v29 = vadd.f32 %v809_v28, %v801_v0 }
 0xfb9   :  { %1466 = vtanh.f32 %v811_v29 }
 0xfc6   :  { %v1467_v30 = vpop.eup %1466 }
 0xfc7   :  { %814 = vrot.lane.b32.xlu0 %v1467_v30, %s1556_s1 }
0x1039   :  { %v815_v31 = vpop.permute.xlu0 %814 }
0x103a   :  { %v817_v32 = vmul.f32 %v1465_v63, %v815_v31 }
0x103c   :  { %820 = vrot.lane.b32.xlu1 %v817_v32, %s1557_s30 }
0x10ae   :  { %v821_v33 = vpop.permute.xlu1 %820 }
0x10af   :  { %1376 = vmatmul.mubr.msk.f32.vlgmr.msra.gmra.mxu1 %vm109_vm8, %v821_v33 }
0x10b0   :  { %1397 = vmatprep.mubr.msk.f32.mxu1 %vm1555_vm0, %v1554_v1  ;;  %1390 = vmatpush3.msra.mxu1 %v1046_v12 }
0x10b1   :  { %1391 = vmatprep.subr.mxu1 %v1554_v1 }
0x10b2   :  { %1392 = vmatpush3.msra.mxu1 %v1045_v13 }
0x10b3   :  { %1393 = vmatprep.subr.mxu1 %v1554_v1 }
0x10b4   :  { %1394 = vmatpush3.msra.mxu1 %v1044_v18 }
0x10b5   :  { %1395 = vmatprep.subr.mxu1 %v1554_v1 }
0x10b6   :  { %1396 = vmatpush3.msra.mxu1 %v1043_v19 }
0x116f   :  { %v890_v35 = vpop.f32.mrf.mxu1 }
0x1170   :  { %v894_v36 = vadd.f32 %v890_v35, %v818_v34 }
0x1171   :  { %v1377_v37 = vpop.f32.mrf.mxu1 }
0x1172   :  { %1468 = vtanh.f32 %v894_v36  ;;  %v1245_v39 = vmul.f32 -1.442695, %v894_v36 }
0x1174   :  { %1470 = vpow2.f32 %v1245_v39 }
0x117f   :  { %v1469_v38 = vpop.eup %1468 }
0x1180   :  { %904 = vrot.lane.b32.xlu0 %v1469_v38, %s1556_s1 }
0x1181   :  { %v1471_v40 = vpop.eup %1470 }
0x1182   :  { %v898_v41 = vadd.f32 1.0, %v1471_v40 }
0x1184   :  { %1472 = vrcp.f32 %v898_v41 }
0x1191   :  { %v1473_v42 = vpop.eup %1472 }
0x1192   :  { %v902_v45 = vmul.f32 %v1473_v42, %v811_v29  ;;  %v1197_v29 = vld [vmem:[#allocation8 + $0x142] ss:$0 sm:$0xff] }
0x11f2   :  { %v905_v43 = vpop.permute.xlu0 %904 }
0x11f3   :  { %v907_v44 = vmul.f32 %v1473_v42, %v905_v43 }
0x11f5   :  { %909 = vrot.lane.b32.xlu1 %v907_v44, %s1556_s1 }
0x1267   :  { %v910_v46 = vpop.permute.xlu1 %909 }
0x1268   :  { %v912_v47 = vadd.f32 %v910_v46, %v902_v45 }
0x126a   :  { %1474 = vtanh.f32 %v912_v47 }
0x1277   :  { %v1475_v48 = vpop.eup %1474 }
0x1278   :  { %915 = vrot.lane.b32.xlu0 %v1475_v48, %s1556_s1 }
0x12ea   :  { %v916_v49 = vpop.permute.xlu0 %915 }
0x12eb   :  { %v918_v50 = vmul.f32 %v1473_v42, %v916_v49 }
0x12ed   :  { %921 = vrot.lane.b32.xlu1 %v918_v50, %s1557_s30 }
0x135f   :  { %v922_v51 = vpop.permute.xlu1 %921 }
0x1360   :  { %1387 = vmatmul.mubr.msk.f32.vlgmr.msra.gmra.mxu0 %vm109_vm8, %v922_v51 }
0x1361   :  { %1408 = vmatprep.mubr.msk.f32.mxu0 %vm1555_vm0, %v1554_v1  ;;  %1401 = vmatpush3.msra.mxu0 %v1042_v20 }
0x1362   :  { %1402 = vmatprep.subr.mxu0 %v1554_v1 }
0x1363   :  { %1403 = vmatpush3.msra.mxu0 %v1041_v21 }
0x1364   :  { %1404 = vmatprep.subr.mxu0 %v1554_v1 }
0x1365   :  { %1405 = vmatpush3.msra.mxu0 %v1040_v61 }
0x1366   :  { %1406 = vmatprep.subr.mxu0 %v1554_v1 }
0x1367   :  { %1407 = vmatpush3.msra.mxu0 %v1039_v22 }
0x1420   :  { %v991_v53 = vpop.f32.mrf.mxu0 }
0x1421   :  { %v995_v54 = vadd.f32 %v991_v53, %v919_v52 }
0x1422   :  { %v1388_v55 = vpop.f32.mrf.mxu0 }
0x1423   :  { %1476 = vtanh.f32 %v995_v54  ;;  %v1247_v59 = vmul.f32 -1.442695, %v995_v54 }
0x1424   :  { %1478 = vtanh.f32 %v1020_v56 }
0x1425   :  { %1480 = vpow2.f32 %v1247_v59 }
0x1426   :  { %1482 = vpow2.f32 %v1248_v60 }
0x1430   :  { %v1477_v57 = vpop.eup %1476 }
0x1431   :  { %1005 = vrot.lane.b32.xlu0 %v1477_v57, %s1556_s1  ;;  %v1479_v58 = vpop.eup %1478 }
0x1432   :  { %v1481_v2 = vpop.eup %1480 }
0x1433   :  { %v999_v3 = vadd.f32 1.0, %v1481_v2  ;;  %v1483_v4 = vpop.eup %1482 }
0x1434   :  { %v1024_v5 = vadd.f32 1.0, %v1483_v4 }
0x1435   :  { %1029 = vrot.lane.b32.xlu0 %v1479_v58, %s1556_s1  ;;  %1484 = vrcp.f32 %v999_v3 }
0x1436   :  { %1486 = vrcp.f32 %v1024_v5 }
0x1442   :  { %v1485_v6 = vpop.eup %1484 }
0x1443   :  { %v1487_v9 = vpop.eup %1486  ;;  %v1003_v15 = vmul.f32 %v1485_v6, %v912_v47 }
0x14a3   :  { %v1006_v7 = vpop.permute.xlu0 %1005 }
0x14a4   :  { %v1008_v8 = vmul.f32 %v1485_v6, %v1006_v7 }
0x14a6   :  { %1010 = vrot.lane.b32.xlu1 %v1008_v8, %s1556_s1 }
0x14a7   :  { %v1030_v10 = vpop.permute.xlu0 %1029 }
0x14a8   :  { %v1032_v11 = vmul.f32 %v1487_v9, %v1030_v10 }
0x14aa   :  { %1488 = vtanh.f32 %v1032_v11 }
0x14b7   :  { %v1489_v14 = vpop.eup %1488 }
0x14b8   :  { %1035 = vrot.lane.b32.xlu0 %v1489_v14, %s1557_s30 }
0x1518   :  { %v1011_v16 = vpop.permute.xlu1 %1010 }
0x1519   :  { %v1013_v17 = vadd.f32 %v1011_v16, %v1003_v15 }
0x151b   :  { %1490 = vtanh.f32 %v1013_v17 }
0x1528   :  { %v1491_v23 = vpop.eup %1490 }
0x1529   :  { %1016 = vrot.lane.b32.xlu1 %v1491_v23, %s1556_s1 }
0x152a   :  { %v1036_v24 = vpop.permute.xlu0 %1035 }
0x152b   :  { %v1038_v62 = vmul.f32 %v1487_v9, %v1036_v24 }
0x152d   :  { %1048 = vrot.lane.b32.xlu1 %v1038_v62, %s1557_s30 }
0x159b   :  { %v1017_v25 = vpop.permute.xlu1 %1016 }
0x159c   :  { %v1019_v63 = vmul.f32 %v1485_v6, %v1017_v25 }
0x159e   :  { %1123 = vrot.lane.b32.xlu0 %v1019_v63, %s1557_s30 }
0x159f   :  { %v1049_v26 = vpop.permute.xlu1 %1048 }
0x15a0   :  { %1398 = vmatmul.mubr.msk.f32.vlgmr.msra.gmra.mxu1 %vm109_vm8, %v1049_v26 }
0x1610   :  { %v1124_v27 = vpop.permute.xlu0 %1123 }
0x1611   :  { %1409 = vmatmul.mubr.msk.f32.vlgmr.msra.gmra.mxu0 %vm109_vm8, %v1124_v27 }
0x1660   :  { %v1118_v0 = vpop.f32.mrf.mxu1 }
0x1662   :  { %v1399_v1 = vpop.f32.mrf.mxu1 }
0x16d1   :  { %v1193_v28 = vpop.f32.mrf.mxu0 }
0x16d2   :  { %v1194_v30 = vadd.f32 %v1193_v28, %v1118_v0 }
0x16d3   :  { %v1410_v31 = vpop.f32.mrf.mxu0 }
0x16d4   :  { %v1198_v32 = vadd.f32 %v1197_v29, %v1194_v30 }
0x16d6   :  { %1199 = vst [vmem:[#allocation9] sm:$0x1] %v1198_v32 }
0x16d7   :  { %1535 = shalt.err (!%p1532_p0)
}
0x16d8   :  { %1209 = dma.vmem_to_hbm [thread:$0]  %s1207_s6, 16, %s1770_s4, [#allocation6]  }
0x16d9   :  { %1548 = dma.done.wait [#allocation6], 16  }
0x16da   :  { %1549 = vsyncadd [#allocation6], 4294967280 }
0x16db   :  { %1213 = vsyncpa [#allocation5], 1 }
0x16dc   :  { %1214 = vsyncpa [#allocation6], 1 }
0x16dd   :  { %1215 = vsyncpa [#allocation7], 1 }

</bundles_post_ra>
